<compile_context>
chip_gen: v7x
topology: tpu7x:2x2x1
jax: 0.10.0
libtpu: 0.0.40
codegen_flags: <defaults>
</compile_context>

<pallas_src>
import jax
import jax.numpy as jnp
from jax.experimental import pallas as pl
from jax.experimental.pallas import tpu as pltpu


def _se_block_kernel(x_ref, w1_ref, w2_ref, o_ref):
    # MXU path: bf16 operands, f32 accumulation.
    y = jnp.dot(x_ref[...].astype(w1_ref.dtype), w1_ref[...],
                preferred_element_type=jnp.float32)              # [TB, RED_P] f32
    y = jnp.maximum(y, 0.0)                                       # VPU
    y = jnp.dot(y.astype(w2_ref.dtype), w2_ref[...],
                preferred_element_type=jnp.float32)              # [TB, C_P] f32
    y = jax.nn.sigmoid(y)                                         # EUP
    # Re-read x for the gate: extra vector loads are free in a mem-bound kernel and this
    # avoids keeping the full f32 input tile live across both matmuls.
    o_ref[...] = (x_ref[...].astype(jnp.float32) * y).astype(o_ref.dtype)


def _round_up(n, m):
    return ((n + m - 1) // m) * m


def prepare_se_weights(w1, w2):
    """One-time prep: pad channel & bottleneck dims to multiples of 128, cast to bf16.

    w1: (C, red)   w2: (red, C)  — PyTorch Linear weights pre-transposed to (in, out).
    Zero padding is inert: padded x columns multiply zero W1 rows, zero bottleneck columns
    give ReLU(0)=0, and padded W2 output columns are gated by zero x columns in x*y.
    """
    C, red = w1.shape
    assert w2.shape == (red, C)
    c_p = _round_up(C, 128)
    red_p = _round_up(red, 128)
    w1 = jnp.pad(w1, ((0, c_p - C), (0, red_p - red)))
    w2 = jnp.pad(w2, ((0, red_p - red), (0, c_p - C)))
    return w1.astype(jnp.bfloat16), w2.astype(jnp.bfloat16)


def _vmem_footprint(tb, c_p, red_p, x_bytes, out_bytes):
    w_bytes = 2 * (c_p * red_p + red_p * c_p)                 # bf16 weights, single-buffered
    io = 2 * tb * c_p * x_bytes + 2 * tb * c_p * out_bytes    # double-buffered x / out blocks
    live = 3 * tb * c_p * 4 + tb * red_p * 4                  # f32 intermediates (y, x*y, slack)
    return io + live + w_bytes + (2 << 20)                    # + headroom


def _choose_batch_tile(B, c_p, red_p, x_bytes, out_bytes, *, block_rows=None,
                       target_block_bytes=4 << 20, vmem_cap_bytes=44 << 20,
                       split_single_block_bytes=2 << 20):
    """Pick a sublane-dense (multiple-of-8) batch tile for a memory-bound kernel."""
    b8 = _round_up(B, 8)
    if block_rows is not None:
        tb = max(8, _round_up(block_rows, 8))                 # guard: keep user tiles 8-aligned
    else:
        tb = max(8, (target_block_bytes // (c_p * x_bytes)) // 8 * 8)
    tb = min(tb, b8)
    # Whole batch fits in one block but is big enough to be worth 2 grid steps:
    # split so the 'parallel' axis can feed v7x's second TensorCore.
    if block_rows is None and tb >= b8 and b8 >= 16 and \
            b8 * c_p * x_bytes >= split_single_block_bytes:
        tb = _round_up((b8 + 1) // 2, 8)
    # Shrink until the VMEM footprint fits the portable cap (v7x: 64 MiB per TC).
    while tb > 8 and _vmem_footprint(tb, c_p, red_p, x_bytes, out_bytes) > vmem_cap_bytes:
        tb = max(8, (tb // 2) // 8 * 8)
    return tb


def se_block(x, w1_p, w2_p, *, out_dtype=None, block_rows=None):
    """x: (B, C), f32 or bf16.  w1_p/w2_p: prepared weights from prepare_se_weights.

    Returns (B, C) in out_dtype (defaults to x.dtype).  Matmuls run with bf16 operands and
    f32 accumulation; elementwise math (ReLU / sigmoid / x*y) is f32.
    """
    B, C = x.shape
    c_p, red_p = w1_p.shape
    assert w2_p.shape == (red_p, c_p)
    assert c_p == _round_up(C, 128), "weights were prepared for a different channel count"
    out_dtype = x.dtype if out_dtype is None else out_dtype

    x_bytes = jnp.dtype(x.dtype).itemsize
    out_bytes = jnp.dtype(out_dtype).itemsize

    tb = _choose_batch_tile(B, c_p, red_p, x_bytes, out_bytes, block_rows=block_rows)
    b_pad = pl.cdiv(B, tb) * tb

    if (b_pad, c_p) != (B, C):
        x = jnp.pad(x, ((0, b_pad - B), (0, c_p - C)))

    vmem_limit = int(max(_vmem_footprint(tb, c_p, red_p, x_bytes, out_bytes), 32 << 20))

    out = pl.pallas_call(
        _se_block_kernel,
        out_shape=jax.ShapeDtypeStruct((b_pad, c_p), out_dtype),
        grid_spec=pltpu.PrefetchScalarGridSpec(
            num_scalar_prefetch=0,
            grid=(b_pad // tb,),
            in_specs=[
                pl.BlockSpec((tb, c_p), lambda i: (i, 0)),        # x: tiled over batch
                pl.BlockSpec((c_p, red_p), lambda i: (0, 0),      # W1: grid-invariant,
                             pipeline_mode=pl.Buffered(1)),       #     single-buffered
                pl.BlockSpec((red_p, c_p), lambda i: (0, 0),      # W2: grid-invariant,
                             pipeline_mode=pl.Buffered(1)),       #     single-buffered
            ],
            out_specs=pl.BlockSpec((tb, c_p), lambda i: (i, 0)),
        ),
        compiler_params=pltpu.CompilerParams(
            dimension_semantics=("parallel",),                    # batch steps -> 2 TCs on v7x
            vmem_limit_bytes=vmem_limit),
    )(x, w1_p, w2_p)
    return out[:B, :C]


if __name__ == "__main__":
    B, C, reduction = 4, 64, 16
    red = C // reduction                                          # 4 -> padded to 128 in prep

    key = jax.random.PRNGKey(0)
    kx, k1, k2 = jax.random.split(key, 3)
    x = jax.random.normal(kx, (B, C), jnp.float32)
    # nn.Linear(C, C//r, bias=False) / nn.Linear(C//r, C, bias=False), stored as (in, out).
    w1 = jax.random.normal(k1, (C, red), jnp.float32) / jnp.sqrt(C)
    w2 = jax.random.normal(k2, (red, C), jnp.float32) / jnp.sqrt(red)

    w1_p, w2_p = prepare_se_weights(w1, w2)
    out = jax.block_until_ready(se_block(x, w1_p, w2_p))

    # Reference with the same bf16 MXU operands and f32 accumulation / elementwise math.
    # (x is rounded to bf16 before the first matmul, so results differ slightly from a pure
    #  f32 PyTorch SEBlock; tolerance below documents the expected deviation.)
    y = jnp.maximum(jnp.dot(x.astype(jnp.bfloat16), w1.astype(jnp.bfloat16),
                            preferred_element_type=jnp.float32), 0.0)
    y = jax.nn.sigmoid(jnp.dot(y.astype(jnp.bfloat16), w2.astype(jnp.bfloat16),
                               preferred_element_type=jnp.float32))
    ref = x * y

    assert out.shape == (B, C)
    assert jnp.allclose(out, ref, atol=1e-4, rtol=1e-4), "mismatch vs JAX reference"
    print("KERNEL_OK")
</pallas_src>

<mosaic_0001>
module attributes {stable_mosaic.version = 11 : i64} {
  func.func @_se_block_kernel(%arg0: i32, %arg1: memref<8x128xf32, #tpu.memory_space<vmem>>, %arg2: memref<128x128xbf16, #tpu.memory_space<vmem>>, %arg3: memref<128x128xbf16, #tpu.memory_space<vmem>>, %arg4: memref<8x128xf32, #tpu.memory_space<vmem>>) attributes {dimension_semantics = [#tpu.dimension_semantics<parallel>], iteration_bounds = array<i64: 1>, scalar_prefetch = 0 : i64, scratch_operands = 0 : i64, tpu.core_type = #tpu.core_type<tc>, window_params = [{transform_indices = @transform_0, window_bounds = array<i64: 8, 128>}, {pipeline_mode = #tpu.pipeline_mode<synchronous>, transform_indices = @transform_1, window_bounds = array<i64: 128, 128>}, {pipeline_mode = #tpu.pipeline_mode<synchronous>, transform_indices = @transform_2, window_bounds = array<i64: 128, 128>}, {transform_indices = @transform_3, window_bounds = array<i64: 8, 128>}]} {
    %c0 = arith.constant 0 : index
    %c0_0 = arith.constant 0 : index
    %0 = vector.load %arg1[%c0, %c0_0] : memref<8x128xf32, #tpu.memory_space<vmem>>, vector<8x128xf32>
    %1 = arith.truncf %0 : vector<8x128xf32> to vector<8x128xbf16>
    %c0_1 = arith.constant 0 : index
    %c0_2 = arith.constant 0 : index
    %2 = vector.load %arg2[%c0_1, %c0_2] : memref<128x128xbf16, #tpu.memory_space<vmem>>, vector<128x128xbf16>
    %cst = arith.constant dense<0.000000e+00> : vector<8x128xf32>
    %3 = tpu.matmul %1, %2, %cst {dimension_numbers = #tpu.dot_dimension_numbers<[1], [0], [0], [1], [0, 0, 1, 1], [], []>} : vector<8x128xbf16>, vector<128x128xbf16>, vector<8x128xf32> -> vector<8x128xf32>
    %cst_3 = arith.constant 0.000000e+00 : f32
    %4 = vector.broadcast %cst_3 : f32 to vector<8x128xf32>
    %5 = arith.maximumf %3, %4 : vector<8x128xf32>
    %6 = arith.truncf %5 : vector<8x128xf32> to vector<8x128xbf16>
    %c0_4 = arith.constant 0 : index
    %c0_5 = arith.constant 0 : index
    %7 = vector.load %arg3[%c0_4, %c0_5] : memref<128x128xbf16, #tpu.memory_space<vmem>>, vector<128x128xbf16>
    %cst_6 = arith.constant dense<0.000000e+00> : vector<8x128xf32>
    %8 = tpu.matmul %6, %7, %cst_6 {dimension_numbers = #tpu.dot_dimension_numbers<[1], [0], [0], [1], [0, 0, 1, 1], [], []>} : vector<8x128xbf16>, vector<128x128xbf16>, vector<8x128xf32> -> vector<8x128xf32>
    %9 = arith.negf %8 : vector<8x128xf32>
    %10 = math.exp %9 : vector<8x128xf32>
    %cst_7 = arith.constant 1.000000e+00 : f32
    %11 = vector.broadcast %cst_7 : f32 to vector<8x128xf32>
    %12 = arith.addf %11, %10 : vector<8x128xf32>
    %13 = arith.divf %11, %12 : vector<8x128xf32>
    %c0_8 = arith.constant 0 : index
    %c0_9 = arith.constant 0 : index
    %14 = vector.load %arg1[%c0_8, %c0_9] : memref<8x128xf32, #tpu.memory_space<vmem>>, vector<8x128xf32>
    %15 = arith.mulf %14, %13 : vector<8x128xf32>
    %c0_10 = arith.constant 0 : index
    %c0_11 = arith.constant 0 : index
    %16 = vector.load %arg4[%c0_10, %c0_11] : memref<8x128xf32, #tpu.memory_space<vmem>>, vector<8x128xf32>
    tpu.vector_store %arg4[%c0_10, %c0_11], %15 {strides = array<i32>} : memref<8x128xf32, #tpu.memory_space<vmem>>, vector<8x128xf32>,
    return
  }
  func.func @transform_0(%arg0: i32) -> (i32, i32) {
    %c0_i32 = arith.constant 0 : i32
    %c0_i32_0 = arith.constant 0 : i32
    return %arg0, %c0_i32 : i32, i32
  }
  func.func @transform_1(%arg0: i32) -> (i32, i32) {
    %c0_i32 = arith.constant 0 : i32
    %c0_i32_0 = arith.constant 0 : i32
    %c0_i32_1 = arith.constant 0 : i32
    return %c0_i32, %c0_i32_0 : i32, i32
  }
  func.func @transform_2(%arg0: i32) -> (i32, i32) {
    %c0_i32 = arith.constant 0 : i32
    %c0_i32_0 = arith.constant 0 : i32
    %c0_i32_1 = arith.constant 0 : i32
    return %c0_i32, %c0_i32_0 : i32, i32
  }
  func.func @transform_3(%arg0: i32) -> (i32, i32) {
    %c0_i32 = arith.constant 0 : i32
    %c0_i32_0 = arith.constant 0 : i32
    return %arg0, %c0_i32 : i32, i32
  }
}

</mosaic_0001>

<bundles_post_ra>
// kernel: tpu_custom_call.1
= control target key start
LH: loop header
LB: loop body
LE: loop exit
PB: predicated region body
PF: predicated region fallthrough
CT: control target
= control target key end

     0   :  { %8 = vsyncpa [#allocation3], 0  ;;  %s570_s0 = inlined_call_operand.hbm [shape: f32[8,128], index: 0, kind: input, shape index: {}]   ;;  %s571_s1 = inlined_call_operand.hbm [shape: bf16[128,128], index: 1, kind: input, shape index: {}]   ;;  %s572_s2 = inlined_call_operand.hbm [shape: bf16[128,128], index: 2, kind: input, shape index: {}]   ;;  %s573_s3 = inlined_call_operand.hbm [shape: f32[8,128], index: 3, kind: output, shape index: {}]  }
   0x1   :  { %9 = vsyncpa [#allocation6], 0 }
   0x2   :  { %10 = vsyncpa [#allocation4], 0  ;;  %s488_s12 = smov [#allocation5]   ;;  %s394_s16 = scalar_lea.hbm %s571_s1, 1024 }
   0x3   :  { %s26_s13 = sshll.u32 %s488_s12, 4  ;;  %p395_p0 = scmp.ne.s32.totalorder %s571_s1, %s394_s16  ;;  %s27_s13 = int_to_ptr.vmem [resolvable:$true] %s26_s13 }
   0x4   :  { %p398_p1 = scmp.lt.u32.totalorder %s394_s16, %s571_s1 }
   0x6   :  { %p400_p2 = pnand %p398_p1, %p395_p0 }
   0x8   :  { %403 = shalt.err (!%p400_p2)
}
   0x9   :  { %s404_s21 = scalar_lea.vmem %s27_s13, 1024  ;;  %p409_p4 = scmp.lt.s32.totalorder %s27_s13, %s27_s13 }
   0xa   :  { %p405_p3 = scmp.ne.s32.totalorder %s27_s13, %s404_s21  ;;  %p410_p5 = scmp.lt.s32.totalorder %s404_s21, %s404_s21 }
   0xc   :  { %p411_p6 = por %p410_p5, %p409_p4 }
   0xe   :  { %p412_p7 = pnand %p411_p6, %p405_p3 }
  0x10   :  { %415 = shalt.err (!%p412_p7)
}
  0x11   :  { %s489_s22 = smov 64   ;;  %s490_s23 = smov 4  }
  0x12   :  { %32 = dma.hbm_to_vmem [thread:$0]  %s571_s1, 1024, %s27_s13, [#allocation6], %s489_s22, %s489_s22, %s490_s23  }
  0x13   :  { %s491_s26 = smov [#allocation2]   ;;  %s492_s28 = smov [#allocation7]  }
  0x14   :  { %s17_s27 = sshll.u32 %s491_s26, 4  ;;  %s38_s29 = sshll.u32 %s492_s28, 4  ;;  %s18_s27 = int_to_ptr.vmem [resolvable:$true] %s17_s27  ;;  %s39_s29 = int_to_ptr.vmem [resolvable:$true] %s38_s29 }
  0x15   :  { %s416_s5 = scalar_lea.hbm %s570_s0, 128 }
  0x16   :  { %p417_p8 = scmp.ne.s32.totalorder %s570_s0, %s416_s5  ;;  %p420_p9 = scmp.lt.u32.totalorder %s416_s5, %s570_s0 }
  0x18   :  { %p422_p10 = pnand %p420_p9, %p417_p8 }
  0x1a   :  { %425 = shalt.err (!%p422_p10)
}
  0x1b   :  { %s426_s1 = scalar_lea.vmem %s18_s27, 128  ;;  %p431_p12 = scmp.lt.s32.totalorder %s18_s27, %s18_s27 }
  0x1c   :  { %p427_p11 = scmp.ne.s32.totalorder %s18_s27, %s426_s1  ;;  %p432_p13 = scmp.lt.s32.totalorder %s426_s1, %s426_s1 }
  0x1e   :  { %p433_p0 = por %p432_p13, %p431_p12 }
  0x20   :  { %p434_p1 = pnand %p433_p0, %p427_p11 }
  0x22   :  { %437 = shalt.err (!%p434_p1)
}
  0x23   :  { %20 = dma.hbm_to_vmem [thread:$0]  %s570_s0, 128, %s18_s27, [#allocation3]  }
  0x24   :  { %s438_s14 = scalar_lea.hbm %s572_s2, 1024 }
  0x25   :  { %p439_p2 = scmp.ne.s32.totalorder %s572_s2, %s438_s14  ;;  %p442_p3 = scmp.lt.u32.totalorder %s438_s14, %s572_s2 }
  0x27   :  { %p444_p4 = pnand %p442_p3, %p439_p2 }
  0x29   :  { %447 = shalt.err (!%p444_p4)
}
  0x2a   :  { %s448_s19 = scalar_lea.vmem %s39_s29, 1024  ;;  %p453_p6 = scmp.lt.s32.totalorder %s39_s29, %s39_s29 }
  0x2b   :  { %p449_p5 = scmp.ne.s32.totalorder %s39_s29, %s448_s19  ;;  %p454_p7 = scmp.lt.s32.totalorder %s448_s19, %s448_s19 }
  0x2d   :  { %p455_p8 = por %p454_p7, %p453_p6 }
  0x2f   :  { %p456_p9 = pnand %p455_p8, %p449_p5 }
  0x31   :  { %459 = shalt.err (!%p456_p9)
}
  0x32   :  { %44 = dma.hbm_to_vmem [thread:$0]  %s572_s2, 1024, %s39_s29, [#allocation6], %s489_s22, %s489_s22, %s490_s23  }
  0x33   :  { %482 = dma.done.wait [#allocation3], 128  }
  0x34   :  { %483 = vsyncadd [#allocation3], 4294967168 }
  0x35   :  { %484 = dma.done.wait [#allocation6], 2048  }
  0x36   :  { %485 = vsyncadd [#allocation6], 4294965248  ;;  %v493_v0 = vmov 0.0   ;;  %vm494_vm0 = vmmov 0   ;;  %v374_v1 = vld [vmem:[#allocation5] sm:$0xff]   ;;  %v375_v2 = vld [vmem:[#allocation5 + $0x8] sm:$0xff]  }
  0x37   :  { %326 = vmatprep.subr.bf16.mxu0 %v493_v0  ;;  %342 = vmatprep.mubr.msk.bf16.mxu0 %vm494_vm0, %v493_v0  ;;  %v376_v3 = vld [vmem:[#allocation5 + $0x10] sm:$0xff]   ;;  %v382_v4 = vld [vmem:[#allocation7] sm:$0xff]   ;;  %v377_v5 = vld [vmem:[#allocation5 + $0x18] sm:$0xff]   ;;  %s495_s2 = smov [#allocation8]  }
  0x38   :  { %346 = vmatprep.subr.bf16.mxu1 %v493_v0  ;;  %362 = vmatprep.mubr.msk.bf16.mxu1 %vm494_vm0, %v493_v0  ;;  %v383_v6 = vld [vmem:[#allocation7 + $0x8] sm:$0xff]   ;;  %v378_v7 = vld [vmem:[#allocation5 + $0x20] sm:$0xff]   ;;  %v384_v8 = vld [vmem:[#allocation7 + $0x10] sm:$0xff]   ;;  %s281_s21 = sshll.u32 %s495_s2, 4  ;;  %s282_s21 = int_to_ptr.vmem [resolvable:$true] %s281_s21 }
  0x39   :  { %327 = vmatpush3.bf16.msra.mxu0 %v374_v1  ;;  %347 = vmatpush3.bf16.msra.mxu1 %v382_v4  ;;  %v379_v9 = vld [vmem:[#allocation5 + $0x28] sm:$0xff]   ;;  %v385_v10 = vld [vmem:[#allocation7 + $0x18] sm:$0xff]   ;;  %v380_v11 = vld [vmem:[#allocation5 + $0x30] sm:$0xff]   ;;  %s460_s22 = scalar_lea.vmem %s282_s21, 128  ;;  %p465_p11 = scmp.lt.s32.totalorder %s282_s21, %s282_s21 }
  0x3a   :  { %328 = vmatprep.subr.bf16.mxu0 %v493_v0  ;;  %348 = vmatprep.subr.bf16.mxu1 %v493_v0  ;;  %v386_v12 = vld [vmem:[#allocation7 + $0x20] sm:$0xff]   ;;  %v381_v13 = vld [vmem:[#allocation5 + $0x38] sm:$0xff]   ;;  %v387_v15 = vld [vmem:[#allocation7 + $0x28] sm:$0xff]   ;;  %p461_p10 = scmp.ne.s32.totalorder %s282_s21, %s460_s22  ;;  %p466_p12 = scmp.lt.s32.totalorder %s460_s22, %s460_s22 }
  0x3b   :  { %v55_v14 = vld [vmem:[#allocation2] sm:$0xff]  ;;  %v388_v17 = vld [vmem:[#allocation7 + $0x30] sm:$0xff]  }
  0x3c   :  { %v56_v16 = vpack.c.bf16 %v55_v14, %v55_v14  ;;  %v389_v18 = vld [vmem:[#allocation7 + $0x38] sm:$0xff]   ;;  %p467_p13 = por %p466_p12, %p465_p11 }
  0x3d   :  { %329 = vmatpush3.bf16.msra.mxu0 %v375_v2  ;;  %349 = vmatpush3.bf16.msra.mxu1 %v383_v6 }
  0x3e   :  { %330 = vmatprep.subr.bf16.mxu0 %v493_v0  ;;  %350 = vmatprep.subr.bf16.mxu1 %v493_v0  ;;  %p468_p0 = pnand %p467_p13, %p461_p10 }
  0x41   :  { %331 = vmatpush3.bf16.msra.mxu0 %v376_v3  ;;  %351 = vmatpush3.bf16.msra.mxu1 %v384_v8 }
  0x42   :  { %332 = vmatprep.subr.bf16.mxu0 %v493_v0  ;;  %352 = vmatprep.subr.bf16.mxu1 %v493_v0 }
  0x45   :  { %333 = vmatpush3.bf16.msra.mxu0 %v377_v5  ;;  %353 = vmatpush3.bf16.msra.mxu1 %v385_v10 }
  0x46   :  { %334 = vmatprep.subr.bf16.mxu0 %v493_v0  ;;  %354 = vmatprep.subr.bf16.mxu1 %v493_v0 }
  0x49   :  { %335 = vmatpush3.bf16.msra.mxu0 %v378_v7  ;;  %355 = vmatpush3.bf16.msra.mxu1 %v386_v12 }
  0x4a   :  { %336 = vmatprep.subr.bf16.mxu0 %v493_v0  ;;  %356 = vmatprep.subr.bf16.mxu1 %v493_v0 }
  0x4d   :  { %337 = vmatpush3.bf16.msra.mxu0 %v379_v9  ;;  %357 = vmatpush3.bf16.msra.mxu1 %v387_v15 }
  0x4e   :  { %338 = vmatprep.subr.bf16.mxu0 %v493_v0  ;;  %358 = vmatprep.subr.bf16.mxu1 %v493_v0 }
  0x51   :  { %339 = vmatpush3.bf16.msra.mxu0 %v380_v11  ;;  %359 = vmatpush3.bf16.msra.mxu1 %v388_v17 }
  0x52   :  { %340 = vmatprep.subr.bf16.mxu0 %v493_v0  ;;  %360 = vmatprep.subr.bf16.mxu1 %v493_v0 }
  0x55   :  { %341 = vmatpush3.bf16.msra.mxu0 %v381_v13  ;;  %361 = vmatpush3.bf16.msra.mxu1 %v389_v18 }
  0x58   :  { %343 = vmatmul.mubr.bf16.vlgmr.msra.gmra.mrb[0].mxu0 %v56_v16 }
 0x12b   :  { %v155_v19 = vpop.f32.mrb[0].mxu0 }
 0x12c   :  { %v161_v20 = vmax.f32 %v155_v19, 0.0  ;;  %v344_v21 = vpop.f32.mrb[1].mxu0 }
 0x12d   :  { %v158_v22 = vpop.f32.mrb[2].mxu0 }
 0x12e   :  { %v162_v23 = vpack.c.bf16 %v161_v20, %v161_v20  ;;  %v345_v24 = vpop.f32.mrb[3].mxu0 }
 0x130   :  { %363 = vmatmul.mubr.bf16.vlgmr.msra.gmra.mrb[0].mxu1 %v162_v23 }
 0x203   :  { %v261_v25 = vpop.f32.mrb[0].mxu1 }
 0x204   :  { %v307_v26 = vmul.f32 -1.442695, %v261_v25  ;;  %v364_v27 = vpop.f32.mrb[1].mxu1 }
 0x205   :  { %v264_v28 = vpop.f32.mrb[2].mxu1 }
 0x206   :  { %390 = vpow2.f32 %v307_v26  ;;  %v365_v29 = vpop.f32.mrb[3].mxu1 }
 0x210   :  { %v391_v30 = vpop.eup %390 }
 0x211   :  { %v270_v31 = vadd.f32 1.0, %v391_v30 }
 0x213   :  { %392 = vrcp.f32 %v270_v31 }
 0x21d   :  { %v393_v32 = vpop.eup %392 }
 0x21e   :  { %v273_v33 = vmul.f32 %v393_v32, %v55_v14 }
 0x220   :  { %274 = vst [vmem:[#allocation8] sm:$0xff] %v273_v33 }
 0x221   :  { %471 = shalt.err (!%p468_p0)
}
 0x222   :  { %s472_s25 = scalar_lea.hbm %s573_s3, 128 }
 0x223   :  { %p473_p1 = scmp.ne.s32.totalorder %s573_s3, %s472_s25  ;;  %p476_p2 = scmp.lt.u32.totalorder %s472_s25, %s573_s3 }
 0x225   :  { %p478_p3 = pnand %p476_p2, %p473_p1 }
 0x227   :  { %481 = shalt.err (!%p478_p3)
}
 0x228   :  { %284 = dma.vmem_to_hbm [thread:$0]  %s282_s21, 128, %s573_s3, [#allocation4]  }
 0x229   :  { %486 = dma.done.wait [#allocation4], 128  }
 0x22a   :  { %487 = vsyncadd [#allocation4], 4294967168 }
 0x22b   :  { %288 = vsyncpa [#allocation3], 1 }
 0x22c   :  { %289 = vsyncpa [#allocation6], 1 }
 0x22d   :  { %290 = vsyncpa [#allocation4], 1 }

</bundles_post_ra>
